<compile_context>
chip_gen: v7x
topology: tpu7x:2x2x1
jax: 0.10.0
libtpu: 0.0.40
codegen_flags: <defaults>
</compile_context>

<pallas_src>
import jax
import jax.numpy as jnp
from jax.experimental import pallas as pl
from jax.experimental.pallas import tpu as pltpu

IN_DIM = 28 * 28     # 784
HID_DIM = 128
OUT_DIM = 10


def _round_up(a, b):
    return (a + b - 1) // b * b


def mlp_kernel(x_ref, w1_ref, b1_ref, w2_ref, b2_ref, o_ref):
    # x_ref:  (bm, 784) f32      w1_ref: (784, 128) bf16   b1_ref: (1, 128) f32
    # w2_ref: (128, 10) bf16     b2_ref: (1, 10)   f32     o_ref:  (bm, 10) f32
    x = x_ref[...].astype(jnp.bfloat16)                       # cast in-kernel (free, VALU)
    h = jnp.dot(x, w1_ref[...],
                preferred_element_type=jnp.float32)           # MXU, f32 acc (K padded internally)
    h = jnp.maximum(h + b1_ref[...], 0.0)                     # bias + ReLU in f32
    y = jnp.dot(h.astype(jnp.bfloat16), w2_ref[...],
                preferred_element_type=jnp.float32)           # MXU, f32 acc
    o_ref[...] = (y + b2_ref[...]).astype(o_ref.dtype)


def _pick_bm(n, block_m):
    """Tile rows: hardware-driven, not batch-driven."""
    if n < 256:
        # Latency path: don't round tiny batches up to 256 rows.
        return max(8, _round_up(n, 8))
    # Keep >= 2 grid steps so v7x's two TensorCores both get work, with
    # MXU/DMA-friendly 256-row granularity, capped at block_m.
    return min(block_m, _round_up(pl.cdiv(n, 2), 256))


def simple_nn_forward(x_nchw, w1, b1, w2, b2, *, block_m=1024):
    """x_nchw: (N, 1, 28, 28) float32 -> logits (N, 10) float32.

    Weights use (in, out) layout: y = x @ W + b  (== PyTorch x @ W_pt.T + b).
    """
    n = x_nchw.shape[0]
    x = x_nchw.reshape(n, IN_DIM)          # free metadata reshape; stays f32 in HBM

    bm = _pick_bm(n, block_m)
    grid = (pl.cdiv(n, bm),)

    # Tiny one-time casts (weights ~200 KB); biases broadcast as (1, dim) rows.
    w1b = w1.astype(jnp.bfloat16)                              # (784, 128)
    w2b = w2.astype(jnp.bfloat16)                              # (128, 10)
    b1r = b1.reshape(1, HID_DIM).astype(jnp.float32)
    b2r = b2.reshape(1, OUT_DIM).astype(jnp.float32)

    # Double-buffered VMEM footprint: f32 x tiles, lane-padded f32 out tiles,
    # resident bf16 weights (+ headroom for matmul/internal scratch).
    footprint = (2 * bm * IN_DIM * 4            # x tiles
                 + 2 * bm * 128 * 4             # out tiles (10 lanes pad to 128)
                 + 2 * IN_DIM * HID_DIM * 2     # W1
                 + 2 * HID_DIM * 128 * 2        # W2 (lane-padded)
                 + (2 << 20))                   # headroom
    vmem_limit = min(max(footprint, 16 * 1024 * 1024), 32 * 1024 * 1024)

    cost = pl.CostEstimate(
        flops=2 * n * (IN_DIM * HID_DIM + HID_DIM * OUT_DIM),
        transcendentals=0,
        bytes_accessed=(n * IN_DIM * 4            # x read (f32)
                        + IN_DIM * HID_DIM * 2    # W1 (bf16)
                        + HID_DIM * OUT_DIM * 2   # W2 (bf16)
                        + (HID_DIM + OUT_DIM) * 4  # biases
                        + n * OUT_DIM * 4),        # logits write
    )

    return pl.pallas_call(
        mlp_kernel,
        out_shape=jax.ShapeDtypeStruct((n, OUT_DIM), jnp.float32),
        grid_spec=pltpu.PrefetchScalarGridSpec(
            num_scalar_prefetch=0,
            grid=grid,
            in_specs=[
                pl.BlockSpec((bm, IN_DIM), lambda i: (i, 0)),        # x tile (ragged last ok)
                pl.BlockSpec((IN_DIM, HID_DIM), lambda i: (0, 0)),   # W1 (resident)
                pl.BlockSpec((1, HID_DIM), lambda i: (0, 0)),        # b1
                pl.BlockSpec((HID_DIM, OUT_DIM), lambda i: (0, 0)),  # W2 (resident)
                pl.BlockSpec((1, OUT_DIM), lambda i: (0, 0)),        # b2
            ],
            out_specs=pl.BlockSpec((bm, OUT_DIM), lambda i: (i, 0)),
        ),
        compiler_params=pltpu.CompilerParams(
            dimension_semantics=("parallel",),
            vmem_limit_bytes=vmem_limit,
        ),
        cost_estimate=cost,
    )(x, w1b, b1r, w2b, b2r)


def init_params(key):
    """Deterministic init mimicking nn.Linear's U(-1/sqrt(fan_in), 1/sqrt(fan_in))."""
    k1, k2, k3, k4 = jax.random.split(key, 4)
    s1 = 1.0 / jnp.sqrt(IN_DIM)
    s2 = 1.0 / jnp.sqrt(HID_DIM)
    w1 = jax.random.uniform(k1, (IN_DIM, HID_DIM), jnp.float32, -s1, s1)
    b1 = jax.random.uniform(k2, (1, HID_DIM), jnp.float32, -s1, s1)
    w2 = jax.random.uniform(k3, (HID_DIM, OUT_DIM), jnp.float32, -s2, s2)
    b2 = jax.random.uniform(k4, (1, OUT_DIM), jnp.float32, -s2, s2)
    return w1, b1, w2, b2


if __name__ == "__main__":
    key = jax.random.PRNGKey(0)
    kx, kp = jax.random.split(key)

    batch = 16
    x = jax.random.normal(kx, (batch, 1, 28, 28), jnp.float32)   # NCHW like PyTorch
    w1, b1, w2, b2 = init_params(kp)

    out = jax.block_until_ready(simple_nn_forward(x, w1, b1, w2, b2))

    # Reference in plain f32 JAX (same math); loose tolerance for bf16 MXU inputs.
    xf = x.reshape(batch, IN_DIM)
    ref = jnp.maximum(xf @ w1 + b1, 0.0) @ w2 + b2
    assert out.shape == (batch, OUT_DIM)
    assert jnp.allclose(out, ref, atol=3e-2, rtol=3e-2)

    print("KERNEL_OK")
</pallas_src>

<mosaic_0001>
module attributes {stable_mosaic.version = 11 : i64} {
  func.func @mlp_kernel(%arg0: i32, %arg1: memref<16x784xf32, #tpu.memory_space<vmem>>, %arg2: memref<784x128xbf16, #tpu.memory_space<vmem>>, %arg3: memref<1x128xf32, #tpu.memory_space<vmem>>, %arg4: memref<128x10xbf16, #tpu.memory_space<vmem>>, %arg5: memref<1x10xf32, #tpu.memory_space<vmem>>, %arg6: memref<16x10xf32, #tpu.memory_space<vmem>>) attributes {dimension_semantics = [#tpu.dimension_semantics<parallel>], iteration_bounds = array<i64: 1>, scalar_prefetch = 0 : i64, scratch_operands = 0 : i64, tpu.core_type = #tpu.core_type<tc>, window_params = [{transform_indices = @transform_0, window_bounds = array<i64: 16, 784>}, {pipeline_mode = #tpu.pipeline_mode<synchronous>, transform_indices = @transform_1, window_bounds = array<i64: 784, 128>}, {pipeline_mode = #tpu.pipeline_mode<synchronous>, transform_indices = @transform_2, window_bounds = array<i64: 1, 128>}, {pipeline_mode = #tpu.pipeline_mode<synchronous>, transform_indices = @transform_3, window_bounds = array<i64: 128, 10>}, {pipeline_mode = #tpu.pipeline_mode<synchronous>, transform_indices = @transform_4, window_bounds = array<i64: 1, 10>}, {transform_indices = @transform_5, window_bounds = array<i64: 16, 10>}]} {
    %c0 = arith.constant 0 : index
    %c0_0 = arith.constant 0 : index
    %0 = vector.load %arg1[%c0, %c0_0] : memref<16x784xf32, #tpu.memory_space<vmem>>, vector<16x784xf32>
    %1 = arith.truncf %0 : vector<16x784xf32> to vector<16x784xbf16>
    %c0_1 = arith.constant 0 : index
    %c0_2 = arith.constant 0 : index
    %2 = vector.load %arg2[%c0_1, %c0_2] : memref<784x128xbf16, #tpu.memory_space<vmem>>, vector<784x128xbf16>
    %cst = arith.constant dense<0.000000e+00> : vector<16x128xf32>
    %3 = tpu.matmul %1, %2, %cst {dimension_numbers = #tpu.dot_dimension_numbers<[1], [0], [0], [1], [0, 0, 1, 1], [], []>} : vector<16x784xbf16>, vector<784x128xbf16>, vector<16x128xf32> -> vector<16x128xf32>
    %c0_3 = arith.constant 0 : index
    %c0_4 = arith.constant 0 : index
    %4 = vector.load %arg3[%c0_3, %c0_4] : memref<1x128xf32, #tpu.memory_space<vmem>>, vector<1x128xf32>
    %5 = vector.broadcast %4 : vector<1x128xf32> to vector<16x128xf32>
    %6 = arith.addf %3, %5 : vector<16x128xf32>
    %cst_5 = arith.constant 0.000000e+00 : f32
    %7 = vector.broadcast %cst_5 : f32 to vector<16x128xf32>
    %8 = arith.maximumf %6, %7 : vector<16x128xf32>
    %9 = arith.truncf %8 : vector<16x128xf32> to vector<16x128xbf16>
    %c0_6 = arith.constant 0 : index
    %c0_7 = arith.constant 0 : index
    %10 = vector.load %arg4[%c0_6, %c0_7] : memref<128x10xbf16, #tpu.memory_space<vmem>>, vector<128x10xbf16>
    %cst_8 = arith.constant dense<0.000000e+00> : vector<16x10xf32>
    %11 = tpu.matmul %9, %10, %cst_8 {dimension_numbers = #tpu.dot_dimension_numbers<[1], [0], [0], [1], [0, 0, 1, 1], [], []>} : vector<16x128xbf16>, vector<128x10xbf16>, vector<16x10xf32> -> vector<16x10xf32>
    %c0_9 = arith.constant 0 : index
    %c0_10 = arith.constant 0 : index
    %12 = vector.load %arg5[%c0_9, %c0_10] : memref<1x10xf32, #tpu.memory_space<vmem>>, vector<1x10xf32>
    %13 = vector.broadcast %12 : vector<1x10xf32> to vector<16x10xf32>
    %14 = arith.addf %11, %13 : vector<16x10xf32>
    %c0_11 = arith.constant 0 : index
    %c0_12 = arith.constant 0 : index
    %15 = vector.load %arg6[%c0_11, %c0_12] : memref<16x10xf32, #tpu.memory_space<vmem>>, vector<16x10xf32>
    tpu.vector_store %arg6[%c0_11, %c0_12], %14 {strides = array<i32>} : memref<16x10xf32, #tpu.memory_space<vmem>>, vector<16x10xf32>,
    return
  }
  func.func @transform_0(%arg0: i32) -> (i32, i32) {
    %c0_i32 = arith.constant 0 : i32
    %c0_i32_0 = arith.constant 0 : i32
    return %arg0, %c0_i32 : i32, i32
  }
  func.func @transform_1(%arg0: i32) -> (i32, i32) {
    %c0_i32 = arith.constant 0 : i32
    %c0_i32_0 = arith.constant 0 : i32
    %c0_i32_1 = arith.constant 0 : i32
    return %c0_i32, %c0_i32_0 : i32, i32
  }
  func.func @transform_2(%arg0: i32) -> (i32, i32) {
    %c0_i32 = arith.constant 0 : i32
    %c0_i32_0 = arith.constant 0 : i32
    %c0_i32_1 = arith.constant 0 : i32
    return %c0_i32, %c0_i32_0 : i32, i32
  }
  func.func @transform_3(%arg0: i32) -> (i32, i32) {
    %c0_i32 = arith.constant 0 : i32
    %c0_i32_0 = arith.constant 0 : i32
    %c0_i32_1 = arith.constant 0 : i32
    return %c0_i32, %c0_i32_0 : i32, i32
  }
  func.func @transform_4(%arg0: i32) -> (i32, i32) {
    %c0_i32 = arith.constant 0 : i32
    %c0_i32_0 = arith.constant 0 : i32
    %c0_i32_1 = arith.constant 0 : i32
    return %c0_i32, %c0_i32_0 : i32, i32
  }
  func.func @transform_5(%arg0: i32) -> (i32, i32) {
    %c0_i32 = arith.constant 0 : i32
    %c0_i32_0 = arith.constant 0 : i32
    return %arg0, %c0_i32 : i32, i32
  }
}

</mosaic_0001>

<bundles_post_ra>
// kernel: tpu_custom_call.1
= control target key start
LH: loop header
LB: loop body
LE: loop exit
PB: predicated region body
PF: predicated region fallthrough
CT: control target
= control target key end

     0   :  { %10 = vsyncpa [#allocation3], 0  ;;  %s1197_s0 = inlined_call_operand.hbm [shape: f32[16,784], index: 0, kind: input, shape index: {}]   ;;  %s1198_s1 = inlined_call_operand.hbm [shape: bf16[784,128], index: 1, kind: input, shape index: {}]   ;;  %s1199_s2 = inlined_call_operand.vmem [shape: f32[1,128], index: 2, kind: input, shape index: {}]   ;;  %s1200_s3 = inlined_call_operand.vmem [shape: bf16[128,10], index: 3, kind: input, shape index: {}]   ;;  %s1201_s4 = inlined_call_operand.vmem [shape: f32[1,10], index: 4, kind: input, shape index: {}]   ;;  %s1202_s5 = inlined_call_operand.hbm [shape: f32[16,10], index: 5, kind: output, shape index: {}]  }
   0x1   :  { %11 = vsyncpa [#allocation6], 0 }
   0x2   :  { %12 = vsyncpa [#allocation4], 0  ;;  %s1077_s18 = smov [#allocation2]   ;;  %s1005_s22 = scalar_lea.hbm %s1197_s0, 1792 }
   0x3   :  { %s18_s19 = sshll.u32 %s1077_s18, 4  ;;  %p1006_p0 = scmp.ne.s32.totalorder %s1197_s0, %s1005_s22  ;;  %s19_s19 = int_to_ptr.vmem [resolvable:$true] %s18_s19 }
   0x4   :  { %p1009_p1 = scmp.lt.u32.totalorder %s1005_s22, %s1197_s0 }
   0x6   :  { %p1011_p2 = pnand %p1009_p1, %p1006_p0 }
   0x8   :  { %1014 = shalt.err (!%p1011_p2)
}
   0x9   :  { %s1015_s27 = scalar_lea.vmem %s19_s19, 1792  ;;  %p1020_p4 = scmp.lt.s32.totalorder %s19_s19, %s19_s19 }
   0xa   :  { %p1016_p3 = scmp.ne.s32.totalorder %s19_s19, %s1015_s27  ;;  %p1021_p5 = scmp.lt.s32.totalorder %s1015_s27, %s1015_s27 }
   0xc   :  { %p1022_p6 = por %p1021_p5, %p1020_p4 }
   0xe   :  { %p1023_p7 = pnand %p1022_p6, %p1016_p3 }
  0x10   :  { %1026 = shalt.err (!%p1023_p7)
}
  0x11   :  { %s1078_s28 = smov 896   ;;  %s1079_s29 = smov 56  }
  0x12   :  { %24 = dma.hbm_to_vmem [thread:$0]  %s1197_s0, 1792, %s19_s19, [#allocation3], %s1078_s28, %s1078_s28, %s1079_s29  }
  0x13   :  { %s1080_s7 = smov [#allocation5]   ;;  %s1027_s11 = scalar_lea.hbm %s1198_s1, 6272 }
  0x14   :  { %s30_s8 = sshll.u32 %s1080_s7, 4  ;;  %p1028_p8 = scmp.ne.s32.totalorder %s1198_s1, %s1027_s11  ;;  %s31_s8 = int_to_ptr.vmem [resolvable:$true] %s30_s8 }
  0x15   :  { %p1031_p9 = scmp.lt.u32.totalorder %s1027_s11, %s1198_s1 }
  0x17   :  { %p1033_p10 = pnand %p1031_p9, %p1028_p8 }
  0x19   :  { %1036 = shalt.err (!%p1033_p10)
}
  0x1a   :  { %s1037_s16 = scalar_lea.vmem %s31_s8, 6272  ;;  %p1042_p12 = scmp.lt.s32.totalorder %s31_s8, %s31_s8 }
  0x1b   :  { %p1038_p11 = scmp.ne.s32.totalorder %s31_s8, %s1037_s16  ;;  %p1043_p13 = scmp.lt.s32.totalorder %s1037_s16, %s1037_s16 }
  0x1d   :  { %p1044_p0 = por %p1043_p13, %p1042_p12 }
  0x1f   :  { %p1045_p1 = pnand %p1044_p0, %p1038_p11 }
  0x21   :  { %1048 = shalt.err (!%p1045_p1)
}
  0x22   :  { %s1081_s0 = smov 64   ;;  %s1082_s17 = smov 4  }
  0x23   :  { %36 = dma.hbm_to_vmem [thread:$0]  %s1198_s1, 6272, %s31_s8, [#allocation6], %s1081_s0, %s1081_s0, %s1082_s17  }
  0x24   :  { %1071 = dma.done.wait [#allocation3], 1792  }
  0x25   :  { %1072 = vsyncadd [#allocation3], 4294965504 }
  0x26   :  { %1073 = dma.done.wait [#allocation6], 6272  }
  0x27   :  { %1074 = vsyncadd [#allocation6], 4294961024  ;;  %v948_v0 = vld [vmem:[#allocation5 + $0x40] sm:$0xff]   ;;  %v952_v4 = vld [vmem:[#allocation5 + $0x48] sm:$0xff]   ;;  %v1083_v43 = vmov 0.0   ;;  %vm1084_vm0 = vmmov 0  }
  0x28   :  { %v949_v1 = vld [vmem:[#allocation5] sm:$0xff]   ;;  %834 = vmatprep.subr.bf16.mxu0 %v948_v0  ;;  %v953_v5 = vld [vmem:[#allocation5 + $0x8] sm:$0xff]   ;;  %v956_v8 = vld [vmem:[#allocation5 + $0x50] sm:$0xff]   ;;  %vm470_vm1 = vcmask 130048   ;;  %vm753_vm2 = vcmask 80896   ;;  %s1085_s12 = smov [#allocation7]  }
  0x29   :  { %v950_v2 = vld [vmem:[#allocation5 + $0xc0] sm:$0xff]   ;;  %835 = vmatpush3.bf16.msra.mxu0 %v949_v1  ;;  %v954_v6 = vld [vmem:[#allocation5 + $0xc8] sm:$0xff]   ;;  %v957_v9 = vld [vmem:[#allocation5 + $0x10] sm:$0xff]   ;;  %s761_s13 = sshll.u32 %s1085_s12, 4  ;;  %s762_s13 = int_to_ptr.vmem [resolvable:$true] %s761_s13 }
  0x2a   :  { %v951_v3 = vld [vmem:[#allocation5 + $0x80] sm:$0xff]   ;;  %856 = vmatprep.subr.bf16.mxu1 %v950_v2  ;;  %836 = vmatprep.subr.bf16.mxu0 %v952_v4  ;;  %v955_v7 = vld [vmem:[#allocation5 + $0x88] sm:$0xff]   ;;  %v958_v10 = vld [vmem:[#allocation5 + $0xd0] sm:$0xff]   ;;  %s1049_s14 = scalar_lea.vmem %s762_s13, 256  ;;  %p1054_p3 = scmp.lt.s32.totalorder %s762_s13, %s762_s13 }
  0x2b   :  { %857 = vmatpush3.bf16.msra.mxu1 %v951_v3  ;;  %v959_v11 = vld [vmem:[#allocation5 + $0x90] sm:$0xff]   ;;  %v960_v12 = vld [vmem:[#allocation5 + $0x58] sm:$0xff]   ;;  %v964_v16 = vld [vmem:[#allocation5 + $0x60] sm:$0xff]   ;;  %p1050_p2 = scmp.ne.s32.totalorder %s762_s13, %s1049_s14  ;;  %p1055_p4 = scmp.lt.s32.totalorder %s1049_s14, %s1049_s14 }
  0x2c   :  { %858 = vmatprep.subr.bf16.mxu1 %v954_v6  ;;  %v961_v13 = vld [vmem:[#allocation5 + $0x18] sm:$0xff]   ;;  %v965_v17 = vld [vmem:[#allocation5 + $0x20] sm:$0xff]   ;;  %v968_v20 = vld [vmem:[#allocation5 + $0x68] sm:$0xff]  }
  0x2d   :  { %837 = vmatpush3.bf16.msra.mxu0 %v953_v5  ;;  %v962_v14 = vld [vmem:[#allocation5 + $0xd8] sm:$0xff]   ;;  %v966_v18 = vld [vmem:[#allocation5 + $0xe0] sm:$0xff]   ;;  %v969_v21 = vld [vmem:[#allocation5 + $0x28] sm:$0xff]   ;;  %p1056_p5 = por %p1055_p4, %p1054_p3 }
  0x2e   :  { %838 = vmatprep.subr.bf16.mxu0 %v956_v8  ;;  %v963_v15 = vld [vmem:[#allocation5 + $0x98] sm:$0xff]   ;;  %v967_v19 = vld [vmem:[#allocation5 + $0xa0] sm:$0xff]   ;;  %v970_v22 = vld [vmem:[#allocation5 + $0xe8] sm:$0xff]  }
  0x2f   :  { %859 = vmatpush3.bf16.msra.mxu1 %v955_v7  ;;  %v971_v23 = vld [vmem:[#allocation5 + $0xa8] sm:$0xff]   ;;  %v972_v24 = vld [vmem:[#allocation5 + $0x70] sm:$0xff]   ;;  %v976_v28 = vld [vmem:[#allocation5 + $0x78] sm:$0xff]   ;;  %p1057_p6 = pnand %p1056_p5, %p1050_p2 }
  0x30   :  { %860 = vmatprep.subr.bf16.mxu1 %v958_v10  ;;  %v973_v25 = vld [vmem:[#allocation5 + $0x30] sm:$0xff]   ;;  %v977_v29 = vld [vmem:[#allocation5 + $0x38] sm:$0xff]   ;;  %v57_v36 = vld [vmem:[#allocation2 + $0x38] sm:$0xff] }
  0x31   :  { %839 = vmatpush3.bf16.msra.mxu0 %v957_v9  ;;  %v974_v26 = vld [vmem:[#allocation5 + $0xf0] sm:$0xff]   ;;  %v978_v30 = vld [vmem:[#allocation5 + $0xf8] sm:$0xff]   ;;  %v980_v38 = vld [vmem:[#allocation5 + $0x140] sm:$0xff]  }
  0x32   :  { %840 = vmatprep.subr.bf16.mxu0 %v960_v12  ;;  %v975_v27 = vld [vmem:[#allocation5 + $0xb0] sm:$0xff]   ;;  %v51_v31 = vld [vmem:[#allocation2 + $0x8] sm:$0xff]  ;;  %v53_v39 = vld [vmem:[#allocation2 + $0x18] sm:$0xff] }
  0x33   :  { %861 = vmatpush3.bf16.msra.mxu1 %v959_v11  ;;  %v58_v32 = vld [vmem:[#allocation2 + $0x40] sm:$0xff]  ;;  %v979_v34 = vld [vmem:[#allocation5 + $0xb8] sm:$0xff]   ;;  %v60_v40 = vld [vmem:[#allocation2 + $0x50] sm:$0xff] }
  0x34   :  { %862 = vmatprep.subr.bf16.mxu1 %v962_v14  ;;  %v65_v33 = vpack.c.bf16 %v58_v32, %v51_v31  ;;  %v50_v35 = vld [vmem:[#allocation2] sm:$0xff]  ;;  %v67_v41 = vpack.c.bf16 %v60_v40, %v53_v39  ;;  %v981_v42 = vld [vmem:[#allocation5 + $0x100] sm:$0xff]   ;;  %v59_v45 = vld [vmem:[#allocation2 + $0x48] sm:$0xff] }
  0x35   :  { %841 = vmatpush3.bf16.msra.mxu0 %v961_v13  ;;  %v64_v37 = vpack.c.bf16 %v57_v36, %v50_v35  ;;  %v52_v44 = vld [vmem:[#allocation2 + $0x10] sm:$0xff]  ;;  %v982_v47 = vld [vmem:[#allocation5 + $0x148] sm:$0xff]   ;;  %v984_v49 = vld [vmem:[#allocation5 + $0x150] sm:$0xff]  }
  0x36   :  { %842 = vmatprep.subr.bf16.mxu0 %v964_v16  ;;  %506 = vmatprep.mubr.bf16.mxu0 %v65_v33  ;;  %v66_v46 = vpack.c.bf16 %v59_v45, %v52_v44  ;;  %v983_v48 = vld [vmem:[#allocation5 + $0x108] sm:$0xff]   ;;  %v985_v50 = vld [vmem:[#allocation5 + $0x110] sm:$0xff]   ;;  %v986_v51 = vld [vmem:[#allocation5 + $0x158] sm:$0xff]  }
  0x37   :  { %863 = vmatpush3.bf16.msra.mxu1 %v963_v15  ;;  %547 = vmatprep.mubr.bf16.mxu1 %v67_v41  ;;  %v987_v52 = vld [vmem:[#allocation5 + $0x118] sm:$0xff]   ;;  %v988_v53 = vld [vmem:[#allocation5 + $0x160] sm:$0xff]   ;;  %v990_v55 = vld [vmem:[#allocation5 + $0x168] sm:$0xff]  }
  0x38   :  { %864 = vmatprep.subr.bf16.mxu1 %v966_v18  ;;  %v989_v54 = vld [vmem:[#allocation5 + $0x120] sm:$0xff]   ;;  %v55_v57 = vld [vmem:[#allocation2 + $0x28] sm:$0xff]  ;;  %v991_v58 = vld [vmem:[#allocation5 + $0x128] sm:$0xff]  }
  0x39   :  { %843 = vmatpush3.bf16.msra.mxu0 %v965_v17  ;;  %v996_v56 = vld [vmem:[#allocation5 + $0x180] sm:$0xff]   ;;  %v992_v59 = vld [vmem:[#allocation5 + $0x170] sm:$0xff]   ;;  %v63_v63 = vld [vmem:[#allocation2 + $0x68] sm:$0xff] }
  0x3a   :  { %844 = vmatprep.subr.bf16.mxu0 %v968_v20  ;;  %v62_v60 = vld [vmem:[#allocation2 + $0x60] sm:$0xff]  ;;  %v56_v62 = vld [vmem:[#allocation2 + $0x30] sm:$0xff]  ;;  %v994_v2 = vld [vmem:[#allocation5 + $0x178] sm:$0xff]  }
  0x3b   :  { %865 = vmatpush3.bf16.msra.mxu1 %v967_v19  ;;  %v69_v61 = vpack.c.bf16 %v62_v60, %v55_v57  ;;  %v70_v0 = vpack.c.bf16 %v63_v63, %v56_v62  ;;  %v993_v1 = vld [vmem:[#allocation5 + $0x130] sm:$0xff]   ;;  %v995_v3 = vld [vmem:[#allocation5 + $0x138] sm:$0xff]   ;;  %v61_v5 = vld [vmem:[#allocation2 + $0x58] sm:$0xff] }
  0x3c   :  { %866 = vmatprep.subr.bf16.mxu1 %v970_v22  ;;  %v54_v4 = vld [vmem:[#allocation2 + $0x20] sm:$0xff]  ;;  %v998_v8 = vld [vmem:[%s1200_s3 + $0x8] sm:$0xff]   ;;  %v999_v9 = vld [vmem:[%s1200_s3 + $0x10] sm:$0xff]  }
  0x3d   :  { %845 = vmatpush3.bf16.msra.mxu0 %v969_v21  ;;  %v68_v6 = vpack.c.bf16 %v61_v5, %v54_v4  ;;  %v997_v7 = vld [vmem:[%s1200_s3] sm:$0xff]   ;;  %v1000_v10 = vld [vmem:[%s1200_s3 + $0x18] sm:$0xff]   ;;  %v1002_v12 = vld [vmem:[%s1200_s3 + $0x28] sm:$0xff]  }
  0x3e   :  { %846 = vmatprep.subr.bf16.mxu0 %v972_v24  ;;  %v1001_v11 = vld [vmem:[%s1200_s3 + $0x20] sm:$0xff]   ;;  %v1003_v13 = vld [vmem:[%s1200_s3 + $0x30] sm:$0xff]   ;;  %v1004_v14 = vld [vmem:[%s1200_s3 + $0x38] sm:$0xff]  }
  0x3f   :  { %867 = vmatpush3.bf16.msra.mxu1 %v971_v23  ;;  %v774_v16 = vld [vmem:[%s1199_s2] ss:$0 sm:$0xff] }
  0x40   :  { %868 = vmatprep.subr.bf16.mxu1 %v974_v26 }
  0x41   :  { %847 = vmatpush3.bf16.msra.mxu0 %v973_v25 }
  0x42   :  { %848 = vmatprep.subr.bf16.mxu0 %v976_v28 }
  0x43   :  { %869 = vmatpush3.bf16.msra.mxu1 %v975_v27 }
  0x44   :  { %870 = vmatprep.subr.bf16.mxu1 %v978_v30 }
  0x45   :  { %849 = vmatpush3.bf16.msra.mxu0 %v977_v29 }
  0x46   :  { %878 = vmatprep.subr.bf16.mxu0 %v980_v38 }
  0x47   :  { %871 = vmatpush3.bf16.msra.mxu1 %v979_v34 }
  0x48   :  { %911 = vmatprep.subr.bf16.mxu1 %v1083_v43  ;;  %507 = vmatmul.mubr.bf16.vlgmr.msra.gmra.mrb[0].mxu0 %v64_v37 }
  0x49   :  { %879 = vmatpush3.bf16.msra.mxu0 %v981_v42  ;;  %588 = vmatprep.mubr.bf16.mxu0 %v69_v61 }
  0x4a   :  { %548 = vmatmul.mubr.bf16.vlgmr.msra.gmra.mrb[0].mxu1 %v66_v46  ;;  %880 = vmatprep.subr.bf16.mxu0 %v982_v47 }
  0x4b   :  { %913 = vmatprep.mubr.msk.bf16.mxu1 %vm1084_vm0, %v1083_v43  ;;  %912 = vmatpush3.bf16.msra.mxu1 %v996_v56 }
  0x4c   :  { %917 = vmatprep.subr.bf16.mxu1 %v1083_v43 }
  0x4d   :  { %881 = vmatpush3.bf16.msra.mxu0 %v983_v48 }
  0x4e   :  { %882 = vmatprep.subr.bf16.mxu0 %v984_v49  ;;  %v825_v49 = vld [vmem:[%s1201_s4] ss:$0 sm:$0xff] }
  0x51   :  { %883 = vmatpush3.bf16.msra.mxu0 %v985_v50 }
  0x52   :  { %884 = vmatprep.subr.bf16.mxu0 %v986_v51  ;;  %914 = vmatmul.mubr.msk.bf16.vlgmr.msra.gmra.mrb[4].mxu1 %vm470_vm1, %v70_v0 }
  0x53   :  { %933 = vmatprep.mubr.msk.bf16.mxu1 %vm1084_vm0, %v1083_v43  ;;  %918 = vmatpush3.bf16.msra.mxu1 %v997_v7 }
  0x54   :  { %919 = vmatprep.subr.bf16.mxu1 %v1083_v43 }
  0x55   :  { %885 = vmatpush3.bf16.msra.mxu0 %v987_v52 }
  0x56   :  { %886 = vmatprep.subr.bf16.mxu0 %v988_v53 }
  0x57   :  { %920 = vmatpush3.bf16.msra.mxu1 %v998_v8 }
  0x58   :  { %921 = vmatprep.subr.bf16.mxu1 %v1083_v43 }
  0x59   :  { %887 = vmatpush3.bf16.msra.mxu0 %v989_v54 }
  0x5a   :  { %888 = vmatprep.subr.bf16.mxu0 %v990_v55 }
  0x5b   :  { %922 = vmatpush3.bf16.msra.mxu1 %v999_v9 }
  0x5c   :  { %923 = vmatprep.subr.bf16.mxu1 %v1083_v43 }
  0x5d   :  { %889 = vmatpush3.bf16.msra.mxu0 %v991_v58 }
  0x5e   :  { %890 = vmatprep.subr.bf16.mxu0 %v992_v59 }
  0x5f   :  { %924 = vmatpush3.bf16.msra.mxu1 %v1000_v10 }
  0x60   :  { %925 = vmatprep.subr.bf16.mxu1 %v1083_v43 }
  0x61   :  { %891 = vmatpush3.bf16.msra.mxu0 %v993_v1 }
  0x62   :  { %892 = vmatprep.subr.bf16.mxu0 %v994_v2 }
  0x63   :  { %926 = vmatpush3.bf16.msra.mxu1 %v1001_v11 }
  0x64   :  { %927 = vmatprep.subr.bf16.mxu1 %v1083_v43 }
  0x65   :  { %893 = vmatpush3.bf16.msra.mxu0 %v995_v3 }
  0x67   :  { %928 = vmatpush3.bf16.msra.mxu1 %v1002_v12 }
  0x68   :  { %589 = vmatmul.mubr.bf16.vlgmr.msra.gmra.mrb[4].mxu0 %v68_v6  ;;  %929 = vmatprep.subr.bf16.mxu1 %v1083_v43 }
  0x6b   :  { %930 = vmatpush3.bf16.msra.mxu1 %v1003_v13 }
  0x6c   :  { %931 = vmatprep.subr.bf16.mxu1 %v1083_v43 }
  0x6f   :  { %932 = vmatpush3.bf16.msra.mxu1 %v1004_v14 }
 0x11b   :  { %v850_v15 = vpop.f32.mrb[0].mxu0 }
 0x11c   :  { %v851_v17 = vpop.f32.mrb[1].mxu0 }
 0x11d   :  { %v852_v18 = vadd.f32 %v851_v17, %v850_v15  ;;  %v853_v19 = vpop.f32.mrb[2].mxu0  ;;  %v872_v20 = vpop.f32.mrb[0].mxu1 }
 0x11e   :  { %v854_v21 = vpop.f32.mrb[3].mxu0  ;;  %v873_v24 = vpop.f32.mrb[1].mxu1 }
 0x11f   :  { %v509_v22 = vadd.f32 %v852_v18, %v774_v16  ;;  %v855_v23 = vadd.f32 %v854_v21, %v853_v19  ;;  %v874_v25 = vadd.f32 %v873_v24, %v872_v20  ;;  %v875_v26 = vpop.f32.mrb[2].mxu1 }
 0x120   :  { %v876_v28 = vpop.f32.mrb[3].mxu1 }
 0x121   :  { %v512_v27 = vadd.f32 %v855_v23, %v774_v16  ;;  %v550_v29 = vadd.f32 %v874_v25, %v509_v22  ;;  %v877_v30 = vadd.f32 %v876_v28, %v875_v26 }
 0x123   :  { %v553_v31 = vadd.f32 %v877_v30, %v512_v27 }
 0x125   :  { %v631_v32 = vpop.f32.mrb[4].mxu1 }
 0x126   :  { %v915_v33 = vpop.f32.mrb[5].mxu1 }
 0x127   :  { %v634_v34 = vpop.f32.mrb[6].mxu1 }
 0x128   :  { %v916_v35 = vpop.f32.mrb[7].mxu1 }
 0x13b   :  { %v894_v36 = vpop.f32.mrb[4].mxu0 }
 0x13c   :  { %v895_v37 = vpop.f32.mrb[5].mxu0 }
 0x13d   :  { %v896_v38 = vadd.f32 %v895_v37, %v894_v36  ;;  %v897_v39 = vpop.f32.mrb[6].mxu0 }
 0x13e   :  { %v898_v40 = vpop.f32.mrb[7].mxu0 }
 0x13f   :  { %v591_v41 = vadd.f32 %v896_v38, %v550_v29  ;;  %v899_v42 = vadd.f32 %v898_v40, %v897_v39 }
 0x141   :  { %v632_v43 = vadd.f32 %v631_v32, %v591_v41  ;;  %v594_v44 = vadd.f32 %v899_v42, %v553_v31 }
 0x143   :  { %v635_v45 = vadd.f32 %v634_v34, %v594_v44  ;;  %v638_v46 = vmax.f32 %v632_v43, 0.0 }
 0x145   :  { %v639_v47 = vmax.f32 %v635_v45, 0.0 }
 0x147   :  { %v640_v48 = vpack.c.bf16 %v639_v47, %v638_v46 }
 0x149   :  { %934 = vmatmul.mubr.bf16.vlgmr.msra.gmra.mrb[8].mxu1 %v640_v48 }
 0x21c   :  { %v746_v50 = vpop.f32.mrb[8].mxu1 }
 0x21d   :  { %v747_v51 = vadd.f32 %v825_v49, %v746_v50  ;;  %v935_v52 = vpop.f32.mrb[9].mxu1 }
 0x21e   :  { %v749_v53 = vpop.f32.mrb[10].mxu1 }
 0x21f   :  { %754 = vst.msk [vmem:[#allocation7] sm:$0xff] %vm753_vm2, %v747_v51  ;;  %v750_v54 = vadd.f32 %v825_v49, %v749_v53  ;;  %v936_v55 = vpop.f32.mrb[11].mxu1 }
 0x221   :  { %755 = vst.msk [vmem:[#allocation7 + $0x8] sm:$0xff] %vm753_vm2, %v750_v54 }
 0x222   :  { %1060 = shalt.err (!%p1057_p6)
}
 0x223   :  { %s1061_s16 = scalar_lea.hbm %s1202_s5, 256 }
 0x224   :  { %p1062_p7 = scmp.ne.s32.totalorder %s1202_s5, %s1061_s16  ;;  %p1065_p8 = scmp.lt.u32.totalorder %s1061_s16, %s1202_s5 }
 0x226   :  { %p1067_p9 = pnand %p1065_p8, %p1062_p7 }
 0x228   :  { %1070 = shalt.err (!%p1067_p9)
}
 0x229   :  { %s1086_s1 = smov 128   ;;  %s1087_s20 = smov 8  }
 0x22a   :  { %767 = dma.vmem_to_hbm [thread:$0]  %s762_s13, 256, %s1202_s5, [#allocation4], %s1086_s1, %s1086_s1, %s1087_s20  }
 0x22b   :  { %1075 = dma.done.wait [#allocation4], 256  }
 0x22c   :  { %1076 = vsyncadd [#allocation4], 4294967040 }
 0x22d   :  { %771 = vsyncpa [#allocation3], 1 }
 0x22e   :  { %772 = vsyncpa [#allocation6], 1 }
 0x22f   :  { %773 = vsyncpa [#allocation4], 1 }

</bundles_post_ra>
